<compile_context>
chip_gen: v7x
topology: tpu7x:2x2x1
jax: 0.10.0
libtpu: 0.0.40
codegen_flags: <defaults>
</compile_context>

<pallas_src>
import functools

import jax
import jax.numpy as jnp
import numpy as np
from jax.experimental import pallas as pl
from jax.experimental.pallas import tpu as pltpu

_LANE = 128
_NEG_LARGE = -1e30  # large-negative fill for padded action lanes (exp -> 0)


def _mlp_softmax_kernel(x_ref, w0_ref, b0_ref, w1_ref, b1_ref, w2_ref, b2_ref,
                        out_ref, *, action_num, a_pad):
    """Fused 2-hidden-layer MLP + softmax on one (tb, state_dim) batch tile."""
    x = x_ref[...]

    h = jnp.dot(x, w0_ref[...], preferred_element_type=jnp.float32) + b0_ref[...]
    h = jnp.maximum(h, 0.0)

    h = jnp.dot(h, w1_ref[...], preferred_element_type=jnp.float32) + b1_ref[...]
    h = jnp.maximum(h, 0.0)

    logits = jnp.dot(h, w2_ref[...], preferred_element_type=jnp.float32) + b2_ref[...]

    if a_pad != action_num:
        # Mask the lane-padding columns so they do not affect the softmax.
        col = jax.lax.broadcasted_iota(jnp.int32, logits.shape, dimension=1)
        logits = jnp.where(col < action_num, logits, _NEG_LARGE)

    # Numerically-stable softmax along the lane axis.
    m = jnp.max(logits, axis=-1, keepdims=True)
    e = jnp.exp(logits - m)
    s = jnp.sum(e, axis=-1, keepdims=True)
    out_ref[...] = (e * pl.reciprocal(s, approx=False)).astype(out_ref.dtype)


def policy_model_forward(state, params, action_num):
    """Pallas equivalent of PolicyModel.forward.

    state:  (batch, state_dim) float32.
    params: (w0, b0, w1, b1, w2, b2) with w_i stored as (in, out), b_i as (out,).
    returns (batch, action_num) softmax probabilities.
    """
    w0, b0, w1, b1, w2, b2 = params
    batch, state_dim = state.shape
    hidden = w0.shape[1]

    # --- lane-dense output: pad the final layer out to a multiple of 128 ---
    a_pad = pl.cdiv(action_num, _LANE) * _LANE
    if a_pad != action_num:
        w2 = jnp.pad(w2, ((0, 0), (0, a_pad - action_num)))
        b2 = jnp.pad(b2, ((0, a_pad - action_num),))

    # Biases as (1, dim) rows so they broadcast cleanly against (tb, dim).
    b0 = b0.reshape(1, hidden)
    b1 = b1.reshape(1, hidden)
    b2 = b2.reshape(1, a_pad)

    # --- batch tiling: multiple-of-8 sublanes, capped tile, parallel grid ---
    tb = min(512, pl.cdiv(batch, 8) * 8)
    batch_padded = pl.cdiv(batch, tb) * tb
    if batch_padded != batch:
        state = jnp.pad(state, ((0, batch_padded - batch), (0, 0)))
    grid = (batch_padded // tb,)

    kernel = functools.partial(_mlp_softmax_kernel,
                               action_num=action_num, a_pad=a_pad)

    out_padded = pl.pallas_call(
        kernel,
        out_shape=jax.ShapeDtypeStruct((batch_padded, a_pad), jnp.float32),
        grid=grid,
        in_specs=[
            pl.BlockSpec((tb, state_dim), lambda i: (i, 0)),       # x tile
            pl.BlockSpec((state_dim, hidden), lambda i: (0, 0)),   # w0 (resident)
            pl.BlockSpec((1, hidden), lambda i: (0, 0)),           # b0
            pl.BlockSpec((hidden, hidden), lambda i: (0, 0)),      # w1
            pl.BlockSpec((1, hidden), lambda i: (0, 0)),           # b1
            pl.BlockSpec((hidden, a_pad), lambda i: (0, 0)),       # w2 (padded)
            pl.BlockSpec((1, a_pad), lambda i: (0, 0)),            # b2 (padded)
        ],
        out_specs=pl.BlockSpec((tb, a_pad), lambda i: (i, 0)),
        compiler_params=pltpu.CompilerParams(
            dimension_semantics=("parallel",)),
    )(state, w0, b0, w1, b1, w2, b2)

    # Contiguous slice back to the logical shape (cheap, fusable by XLA).
    return out_padded[:batch, :action_num]


def _reference_forward(state, params):
    """Pure-JAX reference mirroring the PyTorch module."""
    w0, b0, w1, b1, w2, b2 = params
    h = jnp.maximum(state @ w0 + b0, 0.0)
    h = jnp.maximum(h @ w1 + b1, 0.0)
    logits = h @ w2 + b2
    return jax.nn.softmax(logits, axis=-1)


if __name__ == "__main__":
    key = jax.random.PRNGKey(0)

    # Shapes implied by the module: PolicyModel(state_dim=16,
    # actions=np.arange(8), hidden_dim=128, num_layers=2).
    batch, state_dim, hidden_dim = 2, 16, 128
    actions = np.arange(8)
    action_num = len(actions)

    ks = jax.random.split(key, 7)
    scale0 = 1.0 / np.sqrt(state_dim)
    scaleh = 1.0 / np.sqrt(hidden_dim)
    w0 = jax.random.uniform(ks[0], (state_dim, hidden_dim), jnp.float32,
                            -scale0, scale0)
    b0 = jax.random.uniform(ks[1], (hidden_dim,), jnp.float32, -scale0, scale0)
    w1 = jax.random.uniform(ks[2], (hidden_dim, hidden_dim), jnp.float32,
                            -scaleh, scaleh)
    b1 = jax.random.uniform(ks[3], (hidden_dim,), jnp.float32, -scaleh, scaleh)
    w2 = jax.random.uniform(ks[4], (hidden_dim, action_num), jnp.float32,
                            -scaleh, scaleh)
    b2 = jax.random.uniform(ks[5], (action_num,), jnp.float32, -scaleh, scaleh)
    params = (w0, b0, w1, b1, w2, b2)

    state = jax.random.normal(ks[6], (batch, state_dim), dtype=jnp.float32)

    out = policy_model_forward(state, params, action_num)
    out = jax.block_until_ready(out)

    ref = _reference_forward(state, params)
    np.testing.assert_allclose(np.asarray(out), np.asarray(ref),
                               rtol=1e-5, atol=1e-5)
    assert out.shape == (batch, action_num)
    # Rows are valid probability distributions.
    np.testing.assert_allclose(np.asarray(out).sum(-1), np.ones(batch),
                               rtol=1e-5, atol=1e-5)
    print("KERNEL_OK")
</pallas_src>

<mosaic_0001>
module attributes {stable_mosaic.version = 11 : i64} {
  func.func @_mlp_softmax_kernel(%arg0: i32, %arg1: memref<8x16xf32, #tpu.memory_space<vmem>>, %arg2: memref<16x128xf32, #tpu.memory_space<vmem>>, %arg3: memref<1x128xf32, #tpu.memory_space<vmem>>, %arg4: memref<128x128xf32, #tpu.memory_space<vmem>>, %arg5: memref<1x128xf32, #tpu.memory_space<vmem>>, %arg6: memref<128x128xf32, #tpu.memory_space<vmem>>, %arg7: memref<1x128xf32, #tpu.memory_space<vmem>>, %arg8: memref<8x128xf32, #tpu.memory_space<vmem>>) attributes {dimension_semantics = [#tpu.dimension_semantics<parallel>], iteration_bounds = array<i64: 1>, scalar_prefetch = 0 : i64, scratch_operands = 0 : i64, tpu.core_type = #tpu.core_type<tc>, window_params = [{transform_indices = @transform_0, window_bounds = array<i64: 8, 16>}, {pipeline_mode = #tpu.pipeline_mode<synchronous>, transform_indices = @transform_1, window_bounds = array<i64: 16, 128>}, {pipeline_mode = #tpu.pipeline_mode<synchronous>, transform_indices = @transform_2, window_bounds = array<i64: 1, 128>}, {pipeline_mode = #tpu.pipeline_mode<synchronous>, transform_indices = @transform_3, window_bounds = array<i64: 128, 128>}, {pipeline_mode = #tpu.pipeline_mode<synchronous>, transform_indices = @transform_4, window_bounds = array<i64: 1, 128>}, {pipeline_mode = #tpu.pipeline_mode<synchronous>, transform_indices = @transform_5, window_bounds = array<i64: 128, 128>}, {pipeline_mode = #tpu.pipeline_mode<synchronous>, transform_indices = @transform_6, window_bounds = array<i64: 1, 128>}, {transform_indices = @transform_7, window_bounds = array<i64: 8, 128>}]} {
    %c0 = arith.constant 0 : index
    %c0_0 = arith.constant 0 : index
    %0 = vector.load %arg1[%c0, %c0_0] : memref<8x16xf32, #tpu.memory_space<vmem>>, vector<8x16xf32>
    %c0_1 = arith.constant 0 : index
    %c0_2 = arith.constant 0 : index
    %1 = vector.load %arg2[%c0_1, %c0_2] : memref<16x128xf32, #tpu.memory_space<vmem>>, vector<16x128xf32>
    %cst = arith.constant dense<0.000000e+00> : vector<8x128xf32>
    %2 = tpu.matmul %0, %1, %cst {dimension_numbers = #tpu.dot_dimension_numbers<[1], [0], [0], [1], [0, 0, 1, 1], [], []>} : vector<8x16xf32>, vector<16x128xf32>, vector<8x128xf32> -> vector<8x128xf32>
    %c0_3 = arith.constant 0 : index
    %c0_4 = arith.constant 0 : index
    %3 = vector.load %arg3[%c0_3, %c0_4] : memref<1x128xf32, #tpu.memory_space<vmem>>, vector<1x128xf32>
    %4 = vector.broadcast %3 : vector<1x128xf32> to vector<8x128xf32>
    %5 = arith.addf %2, %4 : vector<8x128xf32>
    %cst_5 = arith.constant 0.000000e+00 : f32
    %6 = vector.broadcast %cst_5 : f32 to vector<8x128xf32>
    %7 = arith.maximumf %5, %6 : vector<8x128xf32>
    %c0_6 = arith.constant 0 : index
    %c0_7 = arith.constant 0 : index
    %8 = vector.load %arg4[%c0_6, %c0_7] : memref<128x128xf32, #tpu.memory_space<vmem>>, vector<128x128xf32>
    %cst_8 = arith.constant dense<0.000000e+00> : vector<8x128xf32>
    %9 = tpu.matmul %7, %8, %cst_8 {dimension_numbers = #tpu.dot_dimension_numbers<[1], [0], [0], [1], [0, 0, 1, 1], [], []>} : vector<8x128xf32>, vector<128x128xf32>, vector<8x128xf32> -> vector<8x128xf32>
    %c0_9 = arith.constant 0 : index
    %c0_10 = arith.constant 0 : index
    %10 = vector.load %arg5[%c0_9, %c0_10] : memref<1x128xf32, #tpu.memory_space<vmem>>, vector<1x128xf32>
    %11 = vector.broadcast %10 : vector<1x128xf32> to vector<8x128xf32>
    %12 = arith.addf %9, %11 : vector<8x128xf32>
    %cst_11 = arith.constant 0.000000e+00 : f32
    %13 = vector.broadcast %cst_11 : f32 to vector<8x128xf32>
    %14 = arith.maximumf %12, %13 : vector<8x128xf32>
    %c0_12 = arith.constant 0 : index
    %c0_13 = arith.constant 0 : index
    %15 = vector.load %arg6[%c0_12, %c0_13] : memref<128x128xf32, #tpu.memory_space<vmem>>, vector<128x128xf32>
    %cst_14 = arith.constant dense<0.000000e+00> : vector<8x128xf32>
    %16 = tpu.matmul %14, %15, %cst_14 {dimension_numbers = #tpu.dot_dimension_numbers<[1], [0], [0], [1], [0, 0, 1, 1], [], []>} : vector<8x128xf32>, vector<128x128xf32>, vector<8x128xf32> -> vector<8x128xf32>
    %c0_15 = arith.constant 0 : index
    %c0_16 = arith.constant 0 : index
    %17 = vector.load %arg7[%c0_15, %c0_16] : memref<1x128xf32, #tpu.memory_space<vmem>>, vector<1x128xf32>
    %18 = vector.broadcast %17 : vector<1x128xf32> to vector<8x128xf32>
    %19 = arith.addf %16, %18 : vector<8x128xf32>
    %20 = tpu.iota {dimensions = array<i32: 1>} : vector<8x128xi32>
    %c8_i32 = arith.constant 8 : i32
    %21 = vector.broadcast %c8_i32 : i32 to vector<8x128xi32>
    %22 = arith.cmpi slt, %20, %21 : vector<8x128xi32>
    %cst_17 = arith.constant -1.000000e+30 : f32
    %23 = vector.broadcast %cst_17 : f32 to vector<8x128xf32>
    %24 = arith.select %22, %19, %23 : vector<8x128xi1>, vector<8x128xf32>
    %cst_18 = arith.constant dense<0xFF800000> : vector<8xf32>
    %25 = vector.multi_reduction <maximumf>, %24, %cst_18 [1] : vector<8x128xf32> to vector<8xf32>
    %26 = vector.shape_cast %25 : vector<8xf32> to vector<8x1xf32>
    %27 = vector.broadcast %26 : vector<8x1xf32> to vector<8x128xf32>
    %28 = arith.subf %24, %27 : vector<8x128xf32>
    %29 = math.exp %28 : vector<8x128xf32>
    %cst_19 = arith.constant dense<0.000000e+00> : vector<8xf32>
    %30 = vector.multi_reduction <add>, %29, %cst_19 [1] : vector<8x128xf32> to vector<8xf32>
    %31 = vector.shape_cast %30 : vector<8xf32> to vector<8x1xf32>
    %32 = tpu.reciprocal %31 : vector<8x1xf32> -> vector<8x1xf32>
    %33 = vector.broadcast %32 : vector<8x1xf32> to vector<8x128xf32>
    %34 = arith.mulf %29, %33 : vector<8x128xf32>
    %c0_20 = arith.constant 0 : index
    %c0_21 = arith.constant 0 : index
    %35 = vector.load %arg8[%c0_20, %c0_21] : memref<8x128xf32, #tpu.memory_space<vmem>>, vector<8x128xf32>
    tpu.vector_store %arg8[%c0_20, %c0_21], %34 {strides = array<i32>} : memref<8x128xf32, #tpu.memory_space<vmem>>, vector<8x128xf32>,
    return
  }
  func.func @transform_0(%arg0: i32) -> (i32, i32) {
    %c0_i32 = arith.constant 0 : i32
    %c0_i32_0 = arith.constant 0 : i32
    return %arg0, %c0_i32 : i32, i32
  }
  func.func @transform_1(%arg0: i32) -> (i32, i32) {
    %c0_i32 = arith.constant 0 : i32
    %c0_i32_0 = arith.constant 0 : i32
    %c0_i32_1 = arith.constant 0 : i32
    return %c0_i32, %c0_i32_0 : i32, i32
  }
  func.func @transform_2(%arg0: i32) -> (i32, i32) {
    %c0_i32 = arith.constant 0 : i32
    %c0_i32_0 = arith.constant 0 : i32
    %c0_i32_1 = arith.constant 0 : i32
    return %c0_i32, %c0_i32_0 : i32, i32
  }
  func.func @transform_3(%arg0: i32) -> (i32, i32) {
    %c0_i32 = arith.constant 0 : i32
    %c0_i32_0 = arith.constant 0 : i32
    %c0_i32_1 = arith.constant 0 : i32
    return %c0_i32, %c0_i32_0 : i32, i32
  }
  func.func @transform_4(%arg0: i32) -> (i32, i32) {
    %c0_i32 = arith.constant 0 : i32
    %c0_i32_0 = arith.constant 0 : i32
    %c0_i32_1 = arith.constant 0 : i32
    return %c0_i32, %c0_i32_0 : i32, i32
  }
  func.func @transform_5(%arg0: i32) -> (i32, i32) {
    %c0_i32 = arith.constant 0 : i32
    %c0_i32_0 = arith.constant 0 : i32
    %c0_i32_1 = arith.constant 0 : i32
    return %c0_i32, %c0_i32_0 : i32, i32
  }
  func.func @transform_6(%arg0: i32) -> (i32, i32) {
    %c0_i32 = arith.constant 0 : i32
    %c0_i32_0 = arith.constant 0 : i32
    %c0_i32_1 = arith.constant 0 : i32
    return %c0_i32, %c0_i32_0 : i32, i32
  }
  func.func @transform_7(%arg0: i32) -> (i32, i32) {
    %c0_i32 = arith.constant 0 : i32
    %c0_i32_0 = arith.constant 0 : i32
    return %arg0, %c0_i32 : i32, i32
  }
}

</mosaic_0001>

<bundles_post_ra>
// kernel: tpu_custom_call.1
= control target key start
LH: loop header
LB: loop body
LE: loop exit
PB: predicated region body
PF: predicated region fallthrough
CT: control target
= control target key end

     0   :  { %12 = vsyncpa [#allocation3], 0  ;;  %s832_s0 = inlined_call_operand.hbm [shape: f32[8,16], index: 0, kind: input, shape index: {}]   ;;  %s833_s1 = inlined_call_operand.hbm [shape: f32[16,128], index: 1, kind: input, shape index: {}]   ;;  %s834_s2 = inlined_call_operand.vmem [shape: f32[1,128], index: 2, kind: input, shape index: {}]   ;;  %s835_s3 = inlined_call_operand.hbm [shape: f32[128,128], index: 3, kind: input, shape index: {}]   ;;  %s836_s4 = inlined_call_operand.vmem [shape: f32[1,128], index: 4, kind: input, shape index: {}]   ;;  %s837_s5 = inlined_call_operand.hbm [shape: f32[128,128], index: 5, kind: input, shape index: {}]   ;;  %s838_s6 = inlined_call_operand.vmem [shape: f32[1,128], index: 6, kind: input, shape index: {}]   ;;  %s839_s7 = inlined_call_operand.hbm [shape: f32[8,128], index: 7, kind: output, shape index: {}]  }
   0x1   :  { %13 = vsyncpa [#allocation6], 0 }
   0x2   :  { %14 = vsyncpa [#allocation9], 0 }
   0x3   :  { %15 = vsyncpa [#allocation4], 0  ;;  %s684_s24 = smov [#allocation5]   ;;  %s566_s28 = scalar_lea.hbm %s833_s1, 256 }
   0x4   :  { %s31_s25 = sshll.u32 %s684_s24, 4  ;;  %p567_p0 = scmp.ne.s32.totalorder %s833_s1, %s566_s28  ;;  %s32_s25 = int_to_ptr.vmem [resolvable:$true] %s31_s25 }
   0x5   :  { %p570_p1 = scmp.lt.u32.totalorder %s566_s28, %s833_s1 }
   0x7   :  { %p572_p2 = pnand %p570_p1, %p567_p0 }
   0x9   :  { %575 = shalt.err (!%p572_p2)
}
   0xa   :  { %s576_s10 = scalar_lea.vmem %s32_s25, 256  ;;  %p581_p4 = scmp.lt.s32.totalorder %s32_s25, %s32_s25 }
   0xb   :  { %p577_p3 = scmp.ne.s32.totalorder %s32_s25, %s576_s10  ;;  %p582_p5 = scmp.lt.s32.totalorder %s576_s10, %s576_s10 }
   0xd   :  { %p583_p6 = por %p582_p5, %p581_p4 }
   0xf   :  { %p584_p7 = pnand %p583_p6, %p577_p3 }
  0x11   :  { %587 = shalt.err (!%p584_p7)
}
  0x12   :  { %s685_s11 = smov 128   ;;  %s686_s12 = smov 8  }
  0x13   :  { %37 = dma.hbm_to_vmem [thread:$0]  %s833_s1, 256, %s32_s25, [#allocation6], %s685_s11, %s685_s11, %s686_s12  }
  0x14   :  { %s687_s15 = smov [#allocation2]   ;;  %s688_s17 = smov [#allocation7]  }
  0x15   :  { %s22_s16 = sshll.u32 %s687_s15, 4  ;;  %s45_s18 = sshll.u32 %s688_s17, 4  ;;  %s23_s16 = int_to_ptr.vmem [resolvable:$true] %s22_s16  ;;  %s46_s18 = int_to_ptr.vmem [resolvable:$true] %s45_s18 }
  0x16   :  { %s588_s21 = scalar_lea.hbm %s832_s0, 128 }
  0x17   :  { %p589_p8 = scmp.ne.s32.totalorder %s832_s0, %s588_s21  ;;  %p592_p9 = scmp.lt.u32.totalorder %s588_s21, %s832_s0 }
  0x19   :  { %p594_p10 = pnand %p592_p9, %p589_p8 }
  0x1b   :  { %597 = shalt.err (!%p594_p10)
}
  0x1c   :  { %s598_s1 = scalar_lea.vmem %s23_s16, 128  ;;  %p603_p12 = scmp.lt.s32.totalorder %s23_s16, %s23_s16 }
  0x1d   :  { %p599_p11 = scmp.ne.s32.totalorder %s23_s16, %s598_s1  ;;  %p604_p13 = scmp.lt.s32.totalorder %s598_s1, %s598_s1 }
  0x1f   :  { %p605_p0 = por %p604_p13, %p603_p12 }
  0x21   :  { %p606_p1 = pnand %p605_p0, %p599_p11 }
  0x23   :  { %609 = shalt.err (!%p606_p1)
}
  0x24   :  { %25 = dma.hbm_to_vmem [thread:$0]  %s832_s0, 128, %s23_s16, [#allocation3]  }
  0x25   :  { %s610_s30 = scalar_lea.hbm %s835_s3, 2048 }
  0x26   :  { %p611_p2 = scmp.ne.s32.totalorder %s835_s3, %s610_s30  ;;  %p614_p3 = scmp.lt.u32.totalorder %s610_s30, %s835_s3 }
  0x28   :  { %p616_p4 = pnand %p614_p3, %p611_p2 }
  0x2a   :  { %619 = shalt.err (!%p616_p4)
}
  0x2b   :  { %s620_s14 = scalar_lea.vmem %s46_s18, 2048  ;;  %p625_p6 = scmp.lt.s32.totalorder %s46_s18, %s46_s18 }
  0x2c   :  { %p621_p5 = scmp.ne.s32.totalorder %s46_s18, %s620_s14  ;;  %p626_p7 = scmp.lt.s32.totalorder %s620_s14, %s620_s14 }
  0x2e   :  { %p627_p8 = por %p626_p7, %p625_p6 }
  0x30   :  { %p628_p9 = pnand %p627_p8, %p621_p5 }
  0x32   :  { %631 = shalt.err (!%p628_p9)
}
  0x33   :  { %51 = dma.hbm_to_vmem [thread:$0]  %s835_s3, 2048, %s46_s18, [#allocation6], %s685_s11, %s685_s11, %s686_s12  }
  0x34   :  { %s689_s16 = smov [#allocation8]   ;;  %s632_s21 = scalar_lea.hbm %s837_s5, 2048 }
  0x35   :  { %s59_s17 = sshll.u32 %s689_s16, 4  ;;  %p633_p10 = scmp.ne.s32.totalorder %s837_s5, %s632_s21  ;;  %s60_s17 = int_to_ptr.vmem [resolvable:$true] %s59_s17 }
  0x36   :  { %p636_p11 = scmp.lt.u32.totalorder %s632_s21, %s837_s5 }
  0x38   :  { %p638_p12 = pnand %p636_p11, %p633_p10 }
  0x3a   :  { %641 = shalt.err (!%p638_p12)
}
  0x3b   :  { %s642_s1 = scalar_lea.vmem %s60_s17, 2048  ;;  %p647_p0 = scmp.lt.s32.totalorder %s60_s17, %s60_s17 }
  0x3c   :  { %p643_p13 = scmp.ne.s32.totalorder %s60_s17, %s642_s1  ;;  %p648_p1 = scmp.lt.s32.totalorder %s642_s1, %s642_s1 }
  0x3e   :  { %p649_p2 = por %p648_p1, %p647_p0 }
  0x40   :  { %p650_p3 = pnand %p649_p2, %p643_p13 }
  0x42   :  { %653 = shalt.err (!%p650_p3)
}
  0x43   :  { %65 = dma.hbm_to_vmem [thread:$0]  %s837_s5, 2048, %s60_s17, [#allocation9], %s685_s11, %s685_s11, %s686_s12  }
  0x44   :  { %676 = dma.done.wait [#allocation3], 128  }
  0x45   :  { %677 = vsyncadd [#allocation3], 4294967168 }
  0x46   :  { %678 = dma.done.wait [#allocation6], 2304  }
  0x47   :  { %679 = vsyncadd [#allocation6], 4294964992 }
  0x48   :  { %680 = dma.done.wait [#allocation9], 2048  }
  0x49   :  { %681 = vsyncadd [#allocation9], 4294965248  ;;  %v690_v0 = vmov 0.0|0.0   ;;  %vm691_vm0 = vmmov 0   ;;  %v692_v1 = vmov 0.0   ;;  %v81_v2 = vld [vmem:[#allocation5] sm:$0xff] }
  0x4a   :  { %501 = vmatprep.subr.bf16.mxu0 %v690_v0  ;;  %428 = vmatprep.mubr.msk.f32.mxu0 %vm691_vm0, %v692_v1  ;;  %v82_v3 = vld [vmem:[#allocation5 + $0x8] sm:$0xff]  ;;  %v165_v5 = vld [vmem:[#allocation7] sm:$0xff]  ;;  %v166_v6 = vld [vmem:[#allocation7 + $0x8] sm:$0xff]  ;;  %vm90_vm1 = vcmask 130048  }
  0x4b   :  { %504 = vmatprep.subr.bf16.mxu1 %v690_v0  ;;  %463 = vmatprep.mubr.msk.f32.mxu1 %vm691_vm0, %v692_v1  ;;  %v502_v4 = vpack.c.bf16 %v82_v3, %v81_v2  ;;  %v167_v7 = vld [vmem:[#allocation7 + $0x10] sm:$0xff]  ;;  %v505_v8 = vpack.c.bf16 %v166_v6, %v165_v5  ;;  %v168_v9 = vld [vmem:[#allocation7 + $0x18] sm:$0xff]  ;;  %v80_v10 = vld [vmem:[#allocation2] sm:$0xff] }
  0x4c   :  { %v508_v11 = vpack.c.bf16 %v168_v9, %v167_v7  ;;  %v169_v12 = vld [vmem:[#allocation7 + $0x20] sm:$0xff]  ;;  %v170_v13 = vld [vmem:[#allocation7 + $0x28] sm:$0xff]  ;;  %v171_v15 = vld [vmem:[#allocation7 + $0x30] sm:$0xff] }
  0x4d   :  { %503 = vmatpush3.bf16.msra.mxu0 %v502_v4  ;;  %506 = vmatpush3.bf16.msra.mxu1 %v505_v8  ;;  %v511_v14 = vpack.c.bf16 %v170_v13, %v169_v12  ;;  %v172_v16 = vld [vmem:[#allocation7 + $0x38] sm:$0xff]  ;;  %v173_v18 = vld [vmem:[#allocation7 + $0x40] sm:$0xff]  ;;  %v174_v19 = vld [vmem:[#allocation7 + $0x48] sm:$0xff] }
  0x4e   :  { %528 = vmatprep.subr.bf16.mxu0 %v690_v0  ;;  %507 = vmatprep.subr.bf16.mxu1 %v690_v0  ;;  %v514_v17 = vpack.c.bf16 %v172_v16, %v171_v15  ;;  %v517_v20 = vpack.c.bf16 %v174_v19, %v173_v18  ;;  %v175_v21 = vld [vmem:[#allocation7 + $0x50] sm:$0xff]  ;;  %v176_v22 = vld [vmem:[#allocation7 + $0x58] sm:$0xff]  ;;  %v177_v24 = vld [vmem:[#allocation7 + $0x60] sm:$0xff] }
  0x4f   :  { %v520_v23 = vpack.c.bf16 %v176_v22, %v175_v21  ;;  %v178_v25 = vld [vmem:[#allocation7 + $0x68] sm:$0xff]  ;;  %v179_v27 = vld [vmem:[#allocation7 + $0x70] sm:$0xff]  ;;  %v180_v28 = vld [vmem:[#allocation7 + $0x78] sm:$0xff] }
  0x50   :  { %429 = vmatmul.mubr.msk.f32.vlgmr.msra.gmra.mrb[0].mxu0 %vm90_vm1, %v80_v10  ;;  %v523_v26 = vpack.c.bf16 %v178_v25, %v177_v24  ;;  %v526_v29 = vpack.c.bf16 %v180_v28, %v179_v27  ;;  %v259_v30 = vld [vmem:[#allocation8] sm:$0xff]  ;;  %v260_v31 = vld [vmem:[#allocation8 + $0x8] sm:$0xff]  ;;  %v261_v32 = vld [vmem:[#allocation8 + $0x10] sm:$0xff] }
  0x51   :  { %498 = vmatprep.mubr.msk.f32.mxu0 %vm691_vm0, %v692_v1  ;;  %509 = vmatpush3.bf16.msra.mxu1 %v508_v11  ;;  %v529_v33 = vpack.c.bf16 %v260_v31, %v259_v30  ;;  %v262_v34 = vld [vmem:[#allocation8 + $0x18] sm:$0xff]  ;;  %v263_v36 = vld [vmem:[#allocation8 + $0x20] sm:$0xff]  ;;  %v264_v37 = vld [vmem:[#allocation8 + $0x28] sm:$0xff] }
  0x52   :  { %510 = vmatprep.subr.bf16.mxu1 %v690_v0  ;;  %v532_v35 = vpack.c.bf16 %v262_v34, %v261_v32  ;;  %v535_v38 = vpack.c.bf16 %v264_v37, %v263_v36  ;;  %v265_v39 = vld [vmem:[#allocation8 + $0x30] sm:$0xff]  ;;  %v266_v40 = vld [vmem:[#allocation8 + $0x38] sm:$0xff]  ;;  %v267_v42 = vld [vmem:[#allocation8 + $0x40] sm:$0xff] }
  0x53   :  { %530 = vmatpush3.bf16.msra.mxu0 %v529_v33  ;;  %v538_v41 = vpack.c.bf16 %v266_v40, %v265_v39  ;;  %v268_v43 = vld [vmem:[#allocation8 + $0x48] sm:$0xff]  ;;  %v269_v45 = vld [vmem:[#allocation8 + $0x50] sm:$0xff]  ;;  %v270_v46 = vld [vmem:[#allocation8 + $0x58] sm:$0xff] }
  0x54   :  { %531 = vmatprep.subr.bf16.mxu0 %v690_v0  ;;  %v541_v44 = vpack.c.bf16 %v268_v43, %v267_v42  ;;  %v544_v47 = vpack.c.bf16 %v270_v46, %v269_v45  ;;  %v271_v48 = vld [vmem:[#allocation8 + $0x60] sm:$0xff]  ;;  %v272_v49 = vld [vmem:[#allocation8 + $0x68] sm:$0xff]  ;;  %v273_v56 = vld [vmem:[#allocation8 + $0x70] sm:$0xff] }
  0x55   :  { %512 = vmatpush3.bf16.msra.mxu1 %v511_v14  ;;  %v547_v50 = vpack.c.bf16 %v272_v49, %v271_v48  ;;  %v383_v51 = vld [vmem:[%s834_s2] ss:$0 sm:$0xff]  ;;  %v274_v57 = vld [vmem:[#allocation8 + $0x78] sm:$0xff] }
  0x56   :  { %513 = vmatprep.subr.bf16.mxu1 %v690_v0  ;;  %v550_v58 = vpack.c.bf16 %v274_v57, %v273_v56  ;;  %v385_v59 = vld [vmem:[%s836_s4] ss:$0 sm:$0xff]  ;;  %s693_s4 = smov [#allocation10]  }
  0x57   :  { %533 = vmatpush3.bf16.msra.mxu0 %v532_v35  ;;  %v386_v2 = vld [vmem:[%s838_s6] ss:$0 sm:$0xff]  ;;  %s372_s28 = sshll.u32 %s693_s4, 4  ;;  %s373_s28 = int_to_ptr.vmem [resolvable:$true] %s372_s28 }
  0x58   :  { %534 = vmatprep.subr.bf16.mxu0 %v690_v0  ;;  %s654_s6 = scalar_lea.vmem %s373_s28, 128  ;;  %p659_p5 = scmp.lt.s32.totalorder %s373_s28, %s373_s28 }
  0x59   :  { %515 = vmatpush3.bf16.msra.mxu1 %v514_v17  ;;  %p655_p4 = scmp.ne.s32.totalorder %s373_s28, %s654_s6  ;;  %p660_p6 = scmp.lt.s32.totalorder %s654_s6, %s654_s6 }
  0x5a   :  { %516 = vmatprep.subr.bf16.mxu1 %v690_v0 }
  0x5b   :  { %536 = vmatpush3.bf16.msra.mxu0 %v535_v38  ;;  %p661_p7 = por %p660_p6, %p659_p5 }
  0x5c   :  { %537 = vmatprep.subr.bf16.mxu0 %v690_v0 }
  0x5d   :  { %518 = vmatpush3.bf16.msra.mxu1 %v517_v20  ;;  %p662_p8 = pnand %p661_p7, %p655_p4 }
  0x5e   :  { %519 = vmatprep.subr.bf16.mxu1 %v690_v0 }
  0x5f   :  { %539 = vmatpush3.bf16.msra.mxu0 %v538_v41 }
  0x60   :  { %540 = vmatprep.subr.bf16.mxu0 %v690_v0 }
  0x61   :  { %521 = vmatpush3.bf16.msra.mxu1 %v520_v23 }
  0x62   :  { %522 = vmatprep.subr.bf16.mxu1 %v690_v0 }
  0x63   :  { %542 = vmatpush3.bf16.msra.mxu0 %v541_v44 }
  0x64   :  { %543 = vmatprep.subr.bf16.mxu0 %v690_v0 }
  0x65   :  { %524 = vmatpush3.bf16.msra.mxu1 %v523_v26 }
  0x66   :  { %525 = vmatprep.subr.bf16.mxu1 %v690_v0 }
  0x67   :  { %545 = vmatpush3.bf16.msra.mxu0 %v544_v47 }
  0x68   :  { %546 = vmatprep.subr.bf16.mxu0 %v690_v0 }
  0x69   :  { %527 = vmatpush3.bf16.msra.mxu1 %v526_v29 }
  0x6b   :  { %548 = vmatpush3.bf16.msra.mxu0 %v547_v50 }
  0x6c   :  { %549 = vmatprep.subr.bf16.mxu0 %v690_v0  ;;  %v352_v0 = vlaneseq }
  0x6e   :  { %v353_v1 = vand.u32 127, %v352_v0 }
  0x6f   :  { %551 = vmatpush3.bf16.msra.mxu0 %v550_v58 }
  0x70   :  { %vm354_vm2 = vcmp.lt.s32.totalorder %v353_v1, 8 }
 0x123   :  { %v160_v52 = vpop.f32.mrb[0].mxu0 }
 0x124   :  { %v161_v53 = vadd.f32 %v383_v51, %v160_v52  ;;  %v430_v54 = vpop.f32.mrb[1].mxu0 }
 0x126   :  { %v164_v55 = vmax.f32 %v161_v53, 0.0 }
 0x128   :  { %464 = vmatmul.mubr.f32.vlgmr.msra.gmra.mrb[0].mxu1 %v164_v55 }
 0x1fb   :  { %v254_v60 = vpop.f32.mrb[0].mxu1 }
 0x1fc   :  { %v255_v61 = vadd.f32 %v385_v59, %v254_v60  ;;  %v465_v62 = vpop.f32.mrb[1].mxu1 }
 0x1fe   :  { %v258_v63 = vmax.f32 %v255_v61, 0.0 }
 0x200   :  { %499 = vmatmul.mubr.f32.vlgmr.msra.gmra.mrb[2].mxu0 %v258_v63 }
 0x2d3   :  { %v348_v3 = vpop.f32.mrb[2].mxu0 }
 0x2d4   :  { %v349_v4 = vadd.f32 %v386_v2, %v348_v3  ;;  %v500_v5 = vpop.f32.mrb[3].mxu0 }
 0x2d6   :  { %v355_v6 = vsel %vm354_vm2, %v349_v4, -1e+30 }
 0x2d7   :  { %356 = vmax.xlane.f32.xlu0 %v355_v6 }
 0x364   :  { %v357_v7 = vpop.xlane.xlu0 %356 }
 0x365   :  { %v358_v8 = vsub.f32 %v355_v6, %v357_v7 }
 0x367   :  { %v359_v9 = vmul.f32 1.442695, %v358_v8 }
 0x369   :  { %562 = vpow2.f32 %v359_v9 }
 0x373   :  { %v563_v10 = vpop.eup %562 }
 0x374   :  { %361 = vadd.xlane.f32.xlu0 %v563_v10 }
 0x401   :  { %v362_v11 = vpop.xlane.xlu0 %361 }
 0x402   :  { %564 = vrcp.f32 %v362_v11 }
 0x40c   :  { %v565_v12 = vpop.eup %564 }
 0x40d   :  { %v364_v13 = vmul.f32 %v565_v12, %v563_v10 }
 0x40f   :  { %365 = vst [vmem:[#allocation10] sm:$0xff] %v364_v13 }
 0x410   :  { %665 = shalt.err (!%p662_p8)
}
 0x411   :  { %s666_s8 = scalar_lea.hbm %s839_s7, 128 }
 0x412   :  { %p667_p9 = scmp.ne.s32.totalorder %s839_s7, %s666_s8  ;;  %p670_p10 = scmp.lt.u32.totalorder %s666_s8, %s839_s7 }
 0x414   :  { %p672_p11 = pnand %p670_p10, %p667_p9 }
 0x416   :  { %675 = shalt.err (!%p672_p11)
}
 0x417   :  { %375 = dma.vmem_to_hbm [thread:$0]  %s373_s28, 128, %s839_s7, [#allocation4]  }
 0x418   :  { %682 = dma.done.wait [#allocation4], 128  }
 0x419   :  { %683 = vsyncadd [#allocation4], 4294967168 }
 0x41a   :  { %379 = vsyncpa [#allocation3], 1 }
 0x41b   :  { %380 = vsyncpa [#allocation6], 1 }
 0x41c   :  { %381 = vsyncpa [#allocation9], 1 }
 0x41d   :  { %382 = vsyncpa [#allocation4], 1 }

</bundles_post_ra>
